<compile_context>
chip_gen: v5e
topology: v5e:2x2
jax: 0.10.0
libtpu: 0.0.40
codegen_flags: <defaults>
</compile_context>

<pallas_src>
import functools

import jax
import jax.numpy as jnp
from jax.experimental import pallas as pl
from jax.experimental.pallas import tpu as pltpu


def _round_up(x, m):
    return ((x + m - 1) // m) * m


def _mlp_attn_kernel(x_ref, w1_ref, b1_ref, w2_ref, b2_ref, out_ref, attn_ref,
                     *, valid_f, compute_dtype, approx_recip):
    # x_ref:  (tm, Fp) row tile        w1_ref: (Fp, Ep)   b1_ref: (1, Ep)
    # w2_ref: (Ep, Fp)                 b2_ref: (1, Fp)
    # Matmuls run on the MXU in `compute_dtype` (f32 by default, bf16 if the
    # caller opts in); accumulation, bias, relu and softmax stay in f32.
    x = x_ref[...].astype(compute_dtype)
    w1 = w1_ref[...].astype(compute_dtype)
    h = jnp.dot(x, w1, preferred_element_type=jnp.float32)
    h = jnp.maximum(h + b1_ref[...].astype(jnp.float32), 0.0)

    w2 = w2_ref[...].astype(compute_dtype)
    o = jnp.dot(h.astype(compute_dtype), w2, preferred_element_type=jnp.float32)
    o = jnp.maximum(o + b2_ref[...].astype(jnp.float32), 0.0)

    # Numerically stable softmax over the (padded) feature axis.
    # Padded lanes hold exactly 0 after relu and every valid lane is >= 0, so
    # the row max is unaffected by padding; the exp of padded lanes is masked
    # to 0 so they never contribute to the denominator or the outputs.
    fp = o.shape[-1]
    m = jnp.max(o, axis=-1, keepdims=True)
    e = jnp.exp(o - m)
    if valid_f != fp:
        col = jax.lax.broadcasted_iota(jnp.int32, o.shape, dimension=1)
        e = jnp.where(col < valid_f, e, 0.0)

    denom = jnp.sum(e, axis=-1, keepdims=True)
    inv = pl.reciprocal(denom, approx=approx_recip)   # folded into both outputs
    attn = e * inv

    attn_ref[...] = attn.astype(attn_ref.dtype)
    out_ref[...] = (attn * o).astype(out_ref.dtype)


def vanilla_mlp_attention(x, w_enc, b_enc, w_dec, b_dec, *,
                          tm=512,
                          compute_dtype=None,
                          approx_recip=False,
                          vmem_budget_bytes=44 * 1024 * 1024):
    """x: (batch, seq, F).  Weights in PyTorch nn.Linear convention:
       w_enc: (E, F), b_enc: (E,), w_dec: (F, E), b_dec: (F,)."""
    batch, seq, F = x.shape
    E, F2 = w_enc.shape
    assert F2 == F, "encoder weight shape mismatch"
    M = batch * seq

    if compute_dtype is None:
        compute_dtype = x.dtype
    out_dtype = x.dtype

    # Lane-dense (multiple of 128) feature / hidden axes.
    Fp = _round_up(F, 128)
    Ep = _round_up(E, 128)

    in_bytes = jnp.dtype(x.dtype).itemsize
    out_bytes = jnp.dtype(out_dtype).itemsize

    # --- pick the row tile: as large as the VMEM budget allows ------------
    tm = max(8, (int(tm) // 8) * 8)
    # Resident weights/biases are double-buffered by default by the pipeline.
    fixed_bytes = 2 * (Fp * Ep + Ep * Fp + Ep + Fp) * in_bytes
    # Per-row cost: double-buffered x tile + 2 double-buffered outputs +
    # f32 h/o intermediates.
    per_row_bytes = 2 * Fp * in_bytes + 2 * 2 * Fp * out_bytes + (Ep + Fp) * 4
    if fixed_bytes + per_row_bytes * tm > vmem_budget_bytes:
        tm = max(8, int((vmem_budget_bytes - fixed_bytes) // per_row_bytes) // 8 * 8)
        # TODO(synk): for very large E/F the resident weights themselves
        # overflow VMEM; the right fix is an E-reduction grid axis (marked
        # "arbitrary", placed last) with a (tm, Fp) f32 accumulator in scratch.
    tm = min(tm, _round_up(M, 8))

    n_tiles = pl.cdiv(M, tm)
    Mp = n_tiles * tm

    # --- pad inputs/weights to the lane-dense, full-tile layout -----------
    x2 = jnp.pad(x.reshape(M, F), ((0, Mp - M), (0, Fp - F)))
    w1 = jnp.pad(w_enc.T, ((0, Fp - F), (0, Ep - E)))            # (Fp, Ep)
    b1 = jnp.pad(b_enc.reshape(1, E), ((0, 0), (0, Ep - E)))     # (1, Ep)
    w2 = jnp.pad(w_dec.T, ((0, Ep - E), (0, Fp - F)))            # (Ep, Fp)
    b2 = jnp.pad(b_dec.reshape(1, F), ((0, 0), (0, Fp - F)))     # (1, Fp)

    est_bytes = fixed_bytes + per_row_bytes * tm
    vmem_limit = int(min(max(2 * est_bytes, 32 * 1024 * 1024), 56 * 1024 * 1024))

    kernel = functools.partial(
        _mlp_attn_kernel,
        valid_f=F,
        compute_dtype=compute_dtype,
        approx_recip=approx_recip,
    )

    out2, attn2 = pl.pallas_call(
        kernel,
        out_shape=(
            jax.ShapeDtypeStruct((Mp, Fp), out_dtype),
            jax.ShapeDtypeStruct((Mp, Fp), out_dtype),
        ),
        grid_spec=pltpu.PrefetchScalarGridSpec(
            num_scalar_prefetch=0,
            grid=(n_tiles,),
            in_specs=[
                pl.BlockSpec((tm, Fp), lambda i: (i, 0)),   # x row tile
                pl.BlockSpec((Fp, Ep), lambda i: (0, 0)),   # encoder weight (constant block)
                pl.BlockSpec((1, Ep), lambda i: (0, 0)),    # encoder bias
                pl.BlockSpec((Ep, Fp), lambda i: (0, 0)),   # decoder weight (constant block)
                pl.BlockSpec((1, Fp), lambda i: (0, 0)),    # decoder bias
            ],
            out_specs=[
                pl.BlockSpec((tm, Fp), lambda i: (i, 0)),   # out
                pl.BlockSpec((tm, Fp), lambda i: (i, 0)),   # attention
            ],
        ),
        compiler_params=pltpu.CompilerParams(
            dimension_semantics=("parallel",),   # row tiles shard across TCs on v7x
            vmem_limit_bytes=vmem_limit,
        ),
    )(x2, w1, b1, w2, b2)

    out = out2[:M, :F].reshape(batch, seq, F)
    attn = attn2[:M, :F].reshape(batch, seq, F)
    return out, attn


def _reference(x, w_enc, b_enc, w_dec, b_dec):
    h = jax.nn.relu(jnp.einsum("bsf,ef->bse", x, w_enc) + b_enc)
    o = jax.nn.relu(jnp.einsum("bse,fe->bsf", h, w_dec) + b_dec)
    attn = jax.nn.softmax(o, axis=-1)
    return attn * o, attn


if __name__ == "__main__":
    key = jax.random.PRNGKey(0)
    batch, seq = 2, 8
    feature_size, encoding_size = 32, 16

    k_x, k_w1, k_b1, k_w2, k_b2 = jax.random.split(key, 5)
    x = jax.random.normal(k_x, (batch, seq, feature_size), dtype=jnp.float32)
    # Deterministic parameter init (shapes follow nn.Linear in the module).
    w_enc = jax.random.normal(k_w1, (encoding_size, feature_size), jnp.float32) * 0.2
    b_enc = jax.random.normal(k_b1, (encoding_size,), jnp.float32) * 0.1
    w_dec = jax.random.normal(k_w2, (feature_size, encoding_size), jnp.float32) * 0.2
    b_dec = jax.random.normal(k_b2, (feature_size,), jnp.float32) * 0.1

    out, attn = vanilla_mlp_attention(x, w_enc, b_enc, w_dec, b_dec)
    jax.block_until_ready((out, attn))

    ref_out, ref_attn = _reference(x, w_enc, b_enc, w_dec, b_dec)
    assert out.shape == (batch, seq, feature_size)
    assert attn.shape == (batch, seq, feature_size)
    assert jnp.allclose(out, ref_out, atol=1e-5, rtol=1e-5)
    assert jnp.allclose(attn, ref_attn, atol=1e-5, rtol=1e-5)
    assert jnp.allclose(jnp.sum(attn, axis=-1), 1.0, atol=1e-5)

    # Ragged row count (M = 15 not a multiple of the row tile) — handled by padding.
    x_odd = jax.random.normal(k_x, (3, 5, feature_size), dtype=jnp.float32)
    out_o, attn_o = vanilla_mlp_attention(x_odd, w_enc, b_enc, w_dec, b_dec, tm=512)
    jax.block_until_ready((out_o, attn_o))
    ref_out_o, ref_attn_o = _reference(x_odd, w_enc, b_enc, w_dec, b_dec)
    assert jnp.allclose(out_o, ref_out_o, atol=1e-5, rtol=1e-5)
    assert jnp.allclose(attn_o, ref_attn_o, atol=1e-5, rtol=1e-5)

    print("KERNEL_OK")
</pallas_src>

<mosaic_0001>
module attributes {stable_mosaic.version = 11 : i64} {
  func.func @_mlp_attn_kernel(%arg0: i32, %arg1: memref<16x128xf32, #tpu.memory_space<vmem>>, %arg2: memref<128x128xf32, #tpu.memory_space<vmem>>, %arg3: memref<1x128xf32, #tpu.memory_space<vmem>>, %arg4: memref<128x128xf32, #tpu.memory_space<vmem>>, %arg5: memref<1x128xf32, #tpu.memory_space<vmem>>, %arg6: memref<16x128xf32, #tpu.memory_space<vmem>>, %arg7: memref<16x128xf32, #tpu.memory_space<vmem>>) attributes {dimension_semantics = [#tpu.dimension_semantics<parallel>], iteration_bounds = array<i64: 1>, scalar_prefetch = 0 : i64, scratch_operands = 0 : i64, tpu.core_type = #tpu.core_type<tc>, window_params = [{transform_indices = @transform_0, window_bounds = array<i64: 16, 128>}, {pipeline_mode = #tpu.pipeline_mode<synchronous>, transform_indices = @transform_1, window_bounds = array<i64: 128, 128>}, {pipeline_mode = #tpu.pipeline_mode<synchronous>, transform_indices = @transform_2, window_bounds = array<i64: 1, 128>}, {pipeline_mode = #tpu.pipeline_mode<synchronous>, transform_indices = @transform_3, window_bounds = array<i64: 128, 128>}, {pipeline_mode = #tpu.pipeline_mode<synchronous>, transform_indices = @transform_4, window_bounds = array<i64: 1, 128>}, {transform_indices = @transform_5, window_bounds = array<i64: 16, 128>}, {transform_indices = @transform_6, window_bounds = array<i64: 16, 128>}]} {
    %c0 = arith.constant 0 : index
    %c0_0 = arith.constant 0 : index
    %0 = vector.load %arg1[%c0, %c0_0] : memref<16x128xf32, #tpu.memory_space<vmem>>, vector<16x128xf32>
    %c0_1 = arith.constant 0 : index
    %c0_2 = arith.constant 0 : index
    %1 = vector.load %arg2[%c0_1, %c0_2] : memref<128x128xf32, #tpu.memory_space<vmem>>, vector<128x128xf32>
    %cst = arith.constant dense<0.000000e+00> : vector<16x128xf32>
    %2 = tpu.matmul %0, %1, %cst {dimension_numbers = #tpu.dot_dimension_numbers<[1], [0], [0], [1], [0, 0, 1, 1], [], []>} : vector<16x128xf32>, vector<128x128xf32>, vector<16x128xf32> -> vector<16x128xf32>
    %c0_3 = arith.constant 0 : index
    %c0_4 = arith.constant 0 : index
    %3 = vector.load %arg3[%c0_3, %c0_4] : memref<1x128xf32, #tpu.memory_space<vmem>>, vector<1x128xf32>
    %4 = vector.broadcast %3 : vector<1x128xf32> to vector<16x128xf32>
    %5 = arith.addf %2, %4 : vector<16x128xf32>
    %cst_5 = arith.constant 0.000000e+00 : f32
    %6 = vector.broadcast %cst_5 : f32 to vector<16x128xf32>
    %7 = arith.maximumf %5, %6 : vector<16x128xf32>
    %c0_6 = arith.constant 0 : index
    %c0_7 = arith.constant 0 : index
    %8 = vector.load %arg4[%c0_6, %c0_7] : memref<128x128xf32, #tpu.memory_space<vmem>>, vector<128x128xf32>
    %cst_8 = arith.constant dense<0.000000e+00> : vector<16x128xf32>
    %9 = tpu.matmul %7, %8, %cst_8 {dimension_numbers = #tpu.dot_dimension_numbers<[1], [0], [0], [1], [0, 0, 1, 1], [], []>} : vector<16x128xf32>, vector<128x128xf32>, vector<16x128xf32> -> vector<16x128xf32>
    %c0_9 = arith.constant 0 : index
    %c0_10 = arith.constant 0 : index
    %10 = vector.load %arg5[%c0_9, %c0_10] : memref<1x128xf32, #tpu.memory_space<vmem>>, vector<1x128xf32>
    %11 = vector.broadcast %10 : vector<1x128xf32> to vector<16x128xf32>
    %12 = arith.addf %9, %11 : vector<16x128xf32>
    %cst_11 = arith.constant 0.000000e+00 : f32
    %13 = vector.broadcast %cst_11 : f32 to vector<16x128xf32>
    %14 = arith.maximumf %12, %13 : vector<16x128xf32>
    %cst_12 = arith.constant dense<0xFF800000> : vector<16xf32>
    %15 = vector.multi_reduction <maximumf>, %14, %cst_12 [1] : vector<16x128xf32> to vector<16xf32>
    %16 = vector.shape_cast %15 : vector<16xf32> to vector<16x1xf32>
    %17 = vector.broadcast %16 : vector<16x1xf32> to vector<16x128xf32>
    %18 = arith.subf %14, %17 : vector<16x128xf32>
    %19 = math.exp %18 : vector<16x128xf32>
    %20 = tpu.iota {dimensions = array<i32: 1>} : vector<16x128xi32>
    %c32_i32 = arith.constant 32 : i32
    %21 = vector.broadcast %c32_i32 : i32 to vector<16x128xi32>
    %22 = arith.cmpi slt, %20, %21 : vector<16x128xi32>
    %cst_13 = arith.constant 0.000000e+00 : f32
    %23 = vector.broadcast %cst_13 : f32 to vector<16x128xf32>
    %24 = arith.select %22, %19, %23 : vector<16x128xi1>, vector<16x128xf32>
    %cst_14 = arith.constant dense<0.000000e+00> : vector<16xf32>
    %25 = vector.multi_reduction <add>, %24, %cst_14 [1] : vector<16x128xf32> to vector<16xf32>
    %26 = vector.shape_cast %25 : vector<16xf32> to vector<16x1xf32>
    %27 = tpu.reciprocal %26 : vector<16x1xf32> -> vector<16x1xf32>
    %28 = vector.broadcast %27 : vector<16x1xf32> to vector<16x128xf32>
    %29 = arith.mulf %24, %28 : vector<16x128xf32>
    %c0_15 = arith.constant 0 : index
    %c0_16 = arith.constant 0 : index
    %30 = vector.load %arg7[%c0_15, %c0_16] : memref<16x128xf32, #tpu.memory_space<vmem>>, vector<16x128xf32>
    tpu.vector_store %arg7[%c0_15, %c0_16], %29 {strides = array<i32>} : memref<16x128xf32, #tpu.memory_space<vmem>>, vector<16x128xf32>,
    %31 = arith.mulf %29, %14 : vector<16x128xf32>
    %c0_17 = arith.constant 0 : index
    %c0_18 = arith.constant 0 : index
    %32 = vector.load %arg6[%c0_17, %c0_18] : memref<16x128xf32, #tpu.memory_space<vmem>>, vector<16x128xf32>
    tpu.vector_store %arg6[%c0_17, %c0_18], %31 {strides = array<i32>} : memref<16x128xf32, #tpu.memory_space<vmem>>, vector<16x128xf32>,
    return
  }
  func.func @transform_0(%arg0: i32) -> (i32, i32) {
    %c0_i32 = arith.constant 0 : i32
    %c0_i32_0 = arith.constant 0 : i32
    return %arg0, %c0_i32 : i32, i32
  }
  func.func @transform_1(%arg0: i32) -> (i32, i32) {
    %c0_i32 = arith.constant 0 : i32
    %c0_i32_0 = arith.constant 0 : i32
    %c0_i32_1 = arith.constant 0 : i32
    return %c0_i32, %c0_i32_0 : i32, i32
  }
  func.func @transform_2(%arg0: i32) -> (i32, i32) {
    %c0_i32 = arith.constant 0 : i32
    %c0_i32_0 = arith.constant 0 : i32
    %c0_i32_1 = arith.constant 0 : i32
    return %c0_i32, %c0_i32_0 : i32, i32
  }
  func.func @transform_3(%arg0: i32) -> (i32, i32) {
    %c0_i32 = arith.constant 0 : i32
    %c0_i32_0 = arith.constant 0 : i32
    %c0_i32_1 = arith.constant 0 : i32
    return %c0_i32, %c0_i32_0 : i32, i32
  }
  func.func @transform_4(%arg0: i32) -> (i32, i32) {
    %c0_i32 = arith.constant 0 : i32
    %c0_i32_0 = arith.constant 0 : i32
    %c0_i32_1 = arith.constant 0 : i32
    return %c0_i32, %c0_i32_0 : i32, i32
  }
  func.func @transform_5(%arg0: i32) -> (i32, i32) {
    %c0_i32 = arith.constant 0 : i32
    %c0_i32_0 = arith.constant 0 : i32
    return %arg0, %c0_i32 : i32, i32
  }
  func.func @transform_6(%arg0: i32) -> (i32, i32) {
    %c0_i32 = arith.constant 0 : i32
    %c0_i32_0 = arith.constant 0 : i32
    return %arg0, %c0_i32 : i32, i32
  }
}

</mosaic_0001>

<bundles_post_ra>
// kernel: tpu_custom_call.1
= control target key start
LH: loop header
LB: loop body
LE: loop exit
PB: predicated region body
PF: predicated region fallthrough
CT: control target
= control target key end

     0   :  { %12 = vsyncpa [#allocation3], 0  ;;  %s516_s0 = inlined_call_operand.hbm [shape: f32[16,128], index: 0, kind: input, shape index: {}]   ;;  %s517_s1 = inlined_call_operand.hbm [shape: f32[128,128], index: 1, kind: input, shape index: {}]   ;;  %s518_s2 = inlined_call_operand.vmem [shape: f32[1,128], index: 2, kind: input, shape index: {}]   ;;  %s519_s3 = inlined_call_operand.hbm [shape: f32[128,128], index: 3, kind: input, shape index: {}]   ;;  %s520_s4 = inlined_call_operand.vmem [shape: f32[1,128], index: 4, kind: input, shape index: {}]   ;;  %s521_s5 = inlined_call_operand.hbm [shape: f32[16,128], index: 5, kind: output, shape index: {0}]   ;;  %s522_s6 = inlined_call_operand.hbm [shape: f32[16,128], index: 6, kind: output, shape index: {1}]  }
   0x1   :  { %13 = vsyncpa [#allocation6], 0 }
   0x2   :  { %14 = vsyncpa [#allocation4], 0 }
   0x3   :  { %15 = vsyncpa [#allocation10], 0  ;;  %s33_s23 = sshll.u32 %s517_s1, 4  ;;  %s433_s24 = smov [#allocation5]   ;;  %s34_s23 = int_to_ptr.hbm [resolvable:$true] %s33_s23 }
   0x4   :  { %s35_s25 = sshll.u32 %s433_s24, 4  ;;  %s20_s28 = sshll.u32 %s516_s0, 4  ;;  %s36_s25 = int_to_ptr.vmem [resolvable:$true] %s35_s25  ;;  %s21_s28 = int_to_ptr.hbm [resolvable:$true] %s20_s28 }
   0x5   :  { %s434_s29 = smov 128   ;;  %s435_s30 = smov 8  }
   0x6   :  { %41 = dma.hbm_to_vmem [thread:$0]  %s34_s23, 2048, %s36_s25, [#allocation6], %s434_s29, %s434_s29, %s435_s30  }
   0x7   :  { %s436_s7 = smov [#allocation2]   ;;  %s48_s1 = sshll.u32 %s519_s3, 4  ;;  %s49_s1 = int_to_ptr.hbm [resolvable:$true] %s48_s1 }
   0x8   :  { %s22_s8 = sshll.u32 %s436_s7, 4  ;;  %s437_s0 = smov [#allocation7]   ;;  %s23_s8 = int_to_ptr.vmem [resolvable:$true] %s22_s8 }
   0x9   :  { %28 = dma.hbm_to_vmem [thread:$0]  %s21_s28, 256, %s23_s8, [#allocation3], %s434_s29, %s434_s29, %s435_s30  }
   0xa   :  { %s50_s11 = sshll.u32 %s437_s0, 4  ;;  %s51_s11 = int_to_ptr.vmem [resolvable:$true] %s50_s11 }
   0xb   :  { %56 = dma.hbm_to_vmem [thread:$0]  %s49_s1, 2048, %s51_s11, [#allocation6], %s434_s29, %s434_s29, %s435_s30  }
   0xc   :  { %425 = dma.done.wait [#allocation3], 256  }
   0xd   :  { %426 = vsyncadd [#allocation3], 4294967040 }
   0xe   :  { %427 = dma.done.wait [#allocation6], 4096  }
   0xf   :  { %428 = vsyncadd [#allocation6], 4294963200  ;;  %v88_v0 = vld [vmem:[#allocation5 + $0x78] sm:$0xff]  ;;  %v87_v1 = vld [vmem:[#allocation5 + $0x70] sm:$0xff]  ;;  %v173_v50 = vlaneseq  ;;  %s237_s17 = sshll.u32 %s522_s6, 4  ;;  %s439_s18 = smov [#allocation8]   ;;  %s238_s17 = int_to_ptr.hbm [resolvable:$true] %s237_s17 }
  0x10   :  { %93 = vmatpush.msra.mxu0 %v88_v0  ;;  %256 = vmatpush.msra.mxu2 %v88_v0  ;;  %v86_v2 = vld [vmem:[#allocation5 + $0x68] sm:$0xff]  ;;  %v85_v3 = vld [vmem:[#allocation5 + $0x60] sm:$0xff]  ;;  %v84_v4 = vld [vmem:[#allocation5 + $0x58] sm:$0xff]  ;;  %s222_s19 = sshll.u32 %s439_s18, 4  ;;  %s224_s22 = sshll.u32 %s521_s5, 4  ;;  %s223_s19 = int_to_ptr.vmem [resolvable:$true] %s222_s19  ;;  %s225_s22 = int_to_ptr.hbm [resolvable:$true] %s224_s22 }
  0x11   :  { %v133_v5 = vld [vmem:[#allocation7 + $0x78] sm:$0xff]  ;;  %v132_v6 = vld [vmem:[#allocation7 + $0x70] sm:$0xff]  ;;  %v131_v8 = vld [vmem:[#allocation7 + $0x68] sm:$0xff]  ;;  %v174_v52 = vand.u32 127, %v173_v50 }
  0x12   :  { %94 = vmatpush.msra.mxu0 %v87_v1  ;;  %257 = vmatpush.msra.mxu2 %v87_v1  ;;  %v83_v7 = vld [vmem:[#allocation5 + $0x50] sm:$0xff]  ;;  %v82_v9 = vld [vmem:[#allocation5 + $0x48] sm:$0xff]  ;;  %v130_v10 = vld [vmem:[#allocation7 + $0x60] sm:$0xff] }
  0x13   :  { %138 = vmatpush.msra.mxu1 %v133_v5  ;;  %272 = vmatpush.msra.mxu3 %v133_v5  ;;  %v81_v11 = vld [vmem:[#allocation5 + $0x40] sm:$0xff]  ;;  %v129_v12 = vld [vmem:[#allocation7 + $0x58] sm:$0xff]  ;;  %v128_v14 = vld [vmem:[#allocation7 + $0x50] sm:$0xff]  ;;  %vm175_vm0 = vcmp.lt.s32.totalorder %v174_v52, 32 }
  0x14   :  { %95 = vmatpush.msra.mxu0 %v86_v2  ;;  %258 = vmatpush.msra.mxu2 %v86_v2  ;;  %v80_v13 = vld [vmem:[#allocation5 + $0x38] sm:$0xff]  ;;  %v79_v15 = vld [vmem:[#allocation5 + $0x30] sm:$0xff]  ;;  %v127_v16 = vld [vmem:[#allocation7 + $0x48] sm:$0xff] }
  0x15   :  { %139 = vmatpush.msra.mxu1 %v132_v6  ;;  %273 = vmatpush.msra.mxu3 %v132_v6  ;;  %v78_v17 = vld [vmem:[#allocation5 + $0x28] sm:$0xff]  ;;  %v126_v18 = vld [vmem:[#allocation7 + $0x40] sm:$0xff]  ;;  %v125_v20 = vld [vmem:[#allocation7 + $0x38] sm:$0xff] }
  0x16   :  { %96 = vmatpush.msra.mxu0 %v85_v3  ;;  %259 = vmatpush.msra.mxu2 %v85_v3  ;;  %v77_v19 = vld [vmem:[#allocation5 + $0x20] sm:$0xff]  ;;  %v76_v21 = vld [vmem:[#allocation5 + $0x18] sm:$0xff]  ;;  %v124_v22 = vld [vmem:[#allocation7 + $0x30] sm:$0xff] }
  0x17   :  { %140 = vmatpush.msra.mxu1 %v131_v8  ;;  %274 = vmatpush.msra.mxu3 %v131_v8  ;;  %v75_v23 = vld [vmem:[#allocation5 + $0x10] sm:$0xff]  ;;  %v123_v24 = vld [vmem:[#allocation7 + $0x28] sm:$0xff]  ;;  %v122_v26 = vld [vmem:[#allocation7 + $0x20] sm:$0xff] }
  0x18   :  { %97 = vmatpush.msra.mxu0 %v84_v4  ;;  %260 = vmatpush.msra.mxu2 %v84_v4  ;;  %v74_v25 = vld [vmem:[#allocation5 + $0x8] sm:$0xff]  ;;  %v73_v27 = vld [vmem:[#allocation5] sm:$0xff]  ;;  %v71_v28 = vld [vmem:[#allocation2] sm:$0xff] }
  0x19   :  { %141 = vmatpush.msra.mxu1 %v130_v10  ;;  %275 = vmatpush.msra.mxu3 %v130_v10  ;;  %v72_v29 = vld [vmem:[#allocation2 + $0x8] sm:$0xff]  ;;  %v120_v31 = vld [vmem:[#allocation7 + $0x10] sm:$0xff]  ;;  %v119_v32 = vld [vmem:[#allocation7 + $0x8] sm:$0xff] }
  0x1a   :  { %98 = vmatpush.msra.mxu0 %v83_v7  ;;  %261 = vmatpush.msra.mxu2 %v83_v7  ;;  %v121_v30 = vld [vmem:[#allocation7 + $0x18] sm:$0xff]  ;;  %v118_v33 = vld [vmem:[#allocation7] sm:$0xff]  ;;  %v295_v34 = vld [vmem:[%s518_s2] ss:$0 sm:$0xff]  ;;  %s438_s2 = smov [#allocation9]  }
  0x1b   :  { %142 = vmatpush.msra.mxu1 %v129_v12  ;;  %276 = vmatpush.msra.mxu3 %v129_v12  ;;  %v296_v41 = vld [vmem:[%s520_s4] ss:$0 sm:$0xff]  ;;  %s235_s4 = sshll.u32 %s438_s2, 4  ;;  %s236_s4 = int_to_ptr.vmem [resolvable:$true] %s235_s4 }
  0x1c   :  { %99 = vmatpush.msra.mxu0 %v82_v9  ;;  %262 = vmatpush.msra.mxu2 %v82_v9 }
  0x1d   :  { %143 = vmatpush.msra.mxu1 %v128_v14  ;;  %277 = vmatpush.msra.mxu3 %v128_v14 }
  0x1e   :  { %100 = vmatpush.msra.mxu0 %v81_v11  ;;  %263 = vmatpush.msra.mxu2 %v81_v11 }
  0x1f   :  { %144 = vmatpush.msra.mxu1 %v127_v16  ;;  %278 = vmatpush.msra.mxu3 %v127_v16 }
  0x20   :  { %101 = vmatpush.msra.mxu0 %v80_v13  ;;  %264 = vmatpush.msra.mxu2 %v80_v13 }
  0x21   :  { %145 = vmatpush.msra.mxu1 %v126_v18  ;;  %279 = vmatpush.msra.mxu3 %v126_v18 }
  0x22   :  { %102 = vmatpush.msra.mxu0 %v79_v15  ;;  %265 = vmatpush.msra.mxu2 %v79_v15 }
  0x23   :  { %146 = vmatpush.msra.mxu1 %v125_v20  ;;  %280 = vmatpush.msra.mxu3 %v125_v20 }
  0x24   :  { %103 = vmatpush.msra.mxu0 %v78_v17  ;;  %266 = vmatpush.msra.mxu2 %v78_v17 }
  0x25   :  { %147 = vmatpush.msra.mxu1 %v124_v22  ;;  %281 = vmatpush.msra.mxu3 %v124_v22 }
  0x26   :  { %104 = vmatpush.msra.mxu0 %v77_v19  ;;  %267 = vmatpush.msra.mxu2 %v77_v19 }
  0x27   :  { %148 = vmatpush.msra.mxu1 %v123_v24  ;;  %282 = vmatpush.msra.mxu3 %v123_v24 }
  0x28   :  { %105 = vmatpush.msra.mxu0 %v76_v21  ;;  %268 = vmatpush.msra.mxu2 %v76_v21 }
  0x29   :  { %149 = vmatpush.msra.mxu1 %v122_v26  ;;  %283 = vmatpush.msra.mxu3 %v122_v26 }
  0x2a   :  { %106 = vmatpush.msra.mxu0 %v75_v23  ;;  %269 = vmatpush.msra.mxu2 %v75_v23 }
  0x2b   :  { %150 = vmatpush.msra.mxu1 %v121_v30  ;;  %284 = vmatpush.msra.mxu3 %v121_v30 }
  0x2c   :  { %107 = vmatpush.msra.mxu0 %v74_v25  ;;  %270 = vmatpush.msra.mxu2 %v74_v25 }
  0x2d   :  { %151 = vmatpush.msra.mxu1 %v120_v31  ;;  %285 = vmatpush.msra.mxu3 %v120_v31 }
  0x2e   :  { %108 = vmatpush.msra.mxu0 %v73_v27  ;;  %271 = vmatpush.msra.mxu2 %v73_v27 }
  0x2f   :  { %109 = vmatmul.f32.vlgmr.msra.gmra.mxu0 %v71_v28  ;;  %112 = vmatmul.f32.vlgmr.msra.gmra.mxu2 %v72_v29 }
  0x30   :  { %152 = vmatpush.msra.mxu1 %v119_v32  ;;  %286 = vmatpush.msra.mxu3 %v119_v32 }
  0x32   :  { %153 = vmatpush.msra.mxu1 %v118_v33  ;;  %287 = vmatpush.msra.mxu3 %v118_v33 }
  0xac   :  { %v110_v35 = vpop.f32.mrf.mxu0 }
  0xad   :  { %v111_v36 = vadd.f32 %v295_v34, %v110_v35 }
  0xaf   :  { %v116_v37 = vmax.f32 %v111_v36, 0.0 }
  0xb1   :  { %154 = vmatmul.f32.vlgmr.msra.gmra.mxu1 %v116_v37 }
  0xb2   :  { %v113_v38 = vpop.f32.mrf.mxu2 }
  0xb3   :  { %v114_v39 = vadd.f32 %v295_v34, %v113_v38 }
  0xb5   :  { %v117_v40 = vmax.f32 %v114_v39, 0.0 }
  0xb7   :  { %157 = vmatmul.f32.vlgmr.msra.gmra.mxu3 %v117_v40 }
 0x12e   :  { %v155_v42 = vpop.f32.mrf.mxu1 }
 0x12f   :  { %v156_v43 = vadd.f32 %v296_v41, %v155_v42 }
 0x131   :  { %v161_v44 = vmax.f32 %v156_v43, 0.0 }
 0x133   :  { %163 = vmax.xlane.f32.xlu0 %v161_v44 }
 0x13a   :  { %v158_v45 = vpop.f32.mrf.mxu3 }
 0x13b   :  { %v159_v46 = vadd.f32 %v296_v41, %v158_v45 }
 0x13d   :  { %v499_v47 = vmax.f32 %v159_v46, 0.0 }
 0x13f   :  { %165 = vmax.xlane.f32.xlu0 %v499_v47 }
 0x1a6   :  { %v164_v48 = vpop.xlane.xlu0 %163 }
 0x1a7   :  { %v167_v49 = vsub.f32 %v161_v44, %v164_v48 }
 0x1a9   :  { %v169_v51 = vmul.f32 1.442695, %v167_v49 }
 0x1ab   :  { %297 = vpow2.f32 %v169_v51 }
 0x1b1   :  { %v298_v53 = vpop.eup %297 }
 0x1b2   :  { %v166_v54 = vpop.xlane.xlu0 %165  ;;  %v176_v55 = vsel %vm175_vm0, %v298_v53, 0.0 }
 0x1b3   :  { %v168_v56 = vsub.f32 %v499_v47, %v166_v54  ;;  %178 = vadd.xlane.f32.xlu1 %v176_v55 }
 0x1b5   :  { %v171_v57 = vmul.f32 1.442695, %v168_v56 }
 0x1b7   :  { %299 = vpow2.f32 %v171_v57 }
 0x1bd   :  { %v300_v58 = vpop.eup %299 }
 0x1be   :  { %v177_v59 = vsel %vm175_vm0, %v300_v58, 0.0 }
 0x1bf   :  { %180 = vadd.xlane.f32.xlu1 %v177_v59 }
 0x226   :  { %v179_v60 = vpop.xlane.xlu1 %178 }
 0x227   :  { %301 = vrcp.f32 %v179_v60  ;;  %v193_v0 = vand.u32 2147483648, %v179_v60  ;;  %v191_v2 = vand.u32 2147483647, %v179_v60  ;;  %vm187_vm2 = vweird.f32 %v179_v60 }
 0x229   :  { %v194_v5 = vor.u32 1.1754944e-38, %v193_v0  ;;  %vm192_vm4 = vcmp.eq.f32.partialorder %v191_v2, 8.507059e+37 }
 0x22d   :  { %v302_v61 = vpop.eup %301 }
 0x22e   :  { %v183_v62 = vmul.f32 %v302_v61, %v179_v60  ;;  %vm188_vm1 = vweird.f32 %v302_v61 }
 0x22f   :  { %vm189_vm3 = vmor %vm187_vm2, %vm188_vm1 }
 0x230   :  { %v184_v63 = vsub.f32 1.0, %v183_v62 }
 0x232   :  { %v185_v1 = vmul.f32 %v302_v61, %v184_v63  ;;  %v181_v3 = vpop.xlane.xlu1 %180 }
 0x233   :  { %303 = vrcp.f32 %v181_v3  ;;  %v207_v13 = vand.u32 2147483648, %v181_v3  ;;  %v205_v15 = vand.u32 2147483647, %v181_v3  ;;  %vm201_vm6 = vweird.f32 %v181_v3 }
 0x234   :  { %v186_v4 = vadd.f32 %v302_v61, %v185_v1 }
 0x235   :  { %v208_v17 = vor.u32 1.1754944e-38, %v207_v13  ;;  %vm206_vm8 = vcmp.eq.f32.partialorder %v205_v15, 8.507059e+37 }
 0x236   :  { %v190_v6 = vsel %vm189_vm3, %v302_v61, %v186_v4 }
 0x237   :  { %v195_v7 = vsel %vm192_vm4, %v194_v5, %v190_v6 }
 0x238   :  { %v210_v8 = vmul.f32 %v195_v7, %v176_v55 }
 0x239   :  { %v304_v9 = vpop.eup %303 }
 0x23a   :  { %v197_v10 = vmul.f32 %v304_v9, %v181_v3  ;;  %v214_v11 = vmul.f32 %v210_v8, %v161_v44  ;;  %212 = vst [vmem:[#allocation9] sm:$0xff] %v210_v8  ;;  %vm202_vm5 = vweird.f32 %v304_v9 }
 0x23b   :  { %vm203_vm7 = vmor %vm201_vm6, %vm202_vm5 }
 0x23c   :  { %v198_v12 = vsub.f32 1.0, %v197_v10  ;;  %216 = vst [vmem:[#allocation8] sm:$0xff] %v214_v11 }
 0x23e   :  { %v199_v14 = vmul.f32 %v304_v9, %v198_v12 }
 0x240   :  { %v200_v16 = vadd.f32 %v304_v9, %v199_v14 }
 0x242   :  { %v204_v18 = vsel %vm203_vm7, %v304_v9, %v200_v16 }
 0x243   :  { %v209_v19 = vsel %vm206_vm8, %v208_v17, %v204_v18 }
 0x244   :  { %v211_v20 = vmul.f32 %v209_v19, %v177_v59 }
 0x246   :  { %213 = vst [vmem:[#allocation9 + $0x8] sm:$0xff] %v211_v20  ;;  %v215_v21 = vmul.f32 %v211_v20, %v499_v47 }
 0x247   :  { %243 = dma.vmem_to_hbm [thread:$0]  %s236_s4, 256, %s238_s17, [#allocation10], %s434_s29, %s434_s29, %s435_s30  }
 0x248   :  { %217 = vst [vmem:[#allocation8 + $0x8] sm:$0xff] %v215_v21 }
 0x249   :  { %230 = dma.vmem_to_hbm [thread:$0]  %s223_s19, 256, %s225_s22, [#allocation4], %s434_s29, %s434_s29, %s435_s30  }
 0x24a   :  { %429 = dma.done.wait [#allocation4], 256  }
 0x24b   :  { %430 = vsyncadd [#allocation4], 4294967040 }
 0x24c   :  { %431 = dma.done.wait [#allocation10], 256  }
 0x24d   :  { %432 = vsyncadd [#allocation10], 4294967040 }
 0x24e   :  { %252 = vsyncpa [#allocation3], 1 }
 0x24f   :  { %253 = vsyncpa [#allocation6], 1 }
 0x250   :  { %254 = vsyncpa [#allocation4], 1 }
 0x251   :  { %255 = vsyncpa [#allocation10], 1 }

</bundles_post_ra>
